<compile_context>
chip_gen: v7x
topology: tpu7x:2x2x1
jax: 0.10.0
libtpu: 0.0.40
codegen_flags: <defaults>
</compile_context>

<pallas_src>
import functools

import jax
import jax.numpy as jnp
from jax.experimental import pallas as pl
from jax.experimental.pallas import tpu as pltpu


H1 = 128            # first hidden width (already lane-dense)
HPAD = 128          # lane-padded width for the second hidden layer
TILE_B_MAX = 4096   # ~a few MiB of VMEM live set; far below every generation's limit
ROW_ALIGN = 256     # bf16 MXU-friendly row tile alignment (multiple of 8 and 128)
MIN_KERNEL_BATCH = 256  # below this, plain jnp is as fast or faster


def _round_up(n, m):
    return ((n + m - 1) // m) * m


def _mlp_kernel(x_ref, w1_ref, b1_ref, w2_ref, b2_ref, w3_ref, b3_ref, o_ref):
    # Layer 1: (tile_b, 30) @ (30, 128) + b1, ReLU. bf16 inputs, f32 accumulate.
    h1 = jnp.dot(x_ref[...], w1_ref[...], preferred_element_type=jnp.float32)
    h1 = jnp.maximum(h1 + b1_ref[...], 0.0).astype(jnp.bfloat16)
    # Layer 2: (tile_b, 128) @ (128, 128[pad from 64]) + b2, ReLU.
    h2 = jnp.dot(h1, w2_ref[...], preferred_element_type=jnp.float32)
    h2 = jnp.maximum(h2 + b2_ref[...], 0.0).astype(jnp.bfloat16)
    # Layer 3: (tile_b, 128) @ (128[pad from 64], action_dim) + b3.
    out = jnp.dot(h2, w3_ref[...], preferred_element_type=jnp.float32) + b3_ref[...]
    o_ref[...] = out.astype(o_ref.dtype)   # f32 accumulate, bf16 store


def prepare_params(params):
    """One-time weight prep (transpose, zero-pad, bf16 cast). Do NOT call per step."""
    w1, b1 = params["w1"], params["b1"]      # (128, 30), (128,)
    w2, b2 = params["w2"], params["b2"]      # (64, 128), (64,)
    w3, b3 = params["w3"], params["b3"]      # (action_dim, 64), (action_dim,)
    in_dim = w1.shape[1]
    h2_dim = w2.shape[0]
    action_dim = w3.shape[0]

    w1t = w1.T.astype(jnp.bfloat16)                                           # (30, 128)
    w2t = jnp.zeros((H1, HPAD), jnp.float32).at[:, :h2_dim].set(w2.T)
    w2t = w2t.astype(jnp.bfloat16)                                            # (128, 128)
    w3t = jnp.zeros((HPAD, action_dim), jnp.float32).at[:h2_dim, :].set(w3.T)
    w3t = w3t.astype(jnp.bfloat16)                                            # (128, A)
    b1r = b1.reshape(1, -1).astype(jnp.float32)                               # (1, 128)
    b2r = jnp.zeros((1, HPAD), jnp.float32).at[:, :h2_dim].set(b2)            # (1, 128)
    b3r = b3.reshape(1, -1).astype(jnp.float32)                               # (1, A)

    return {
        "w1t": w1t, "b1r": b1r,
        "w2t": w2t, "b2r": b2r,
        "w3t": w3t, "b3r": b3r,
        "in_dim": in_dim, "action_dim": action_dim,
    }


def _forward_jnp(x, prepared):
    """Small-batch fallback with identical numerics (bf16 weights, f32 accumulation)."""
    xb = x.astype(jnp.bfloat16)
    h1 = jnp.dot(xb, prepared["w1t"], preferred_element_type=jnp.float32) + prepared["b1r"]
    h1 = jnp.maximum(h1, 0.0).astype(jnp.bfloat16)
    h2 = jnp.dot(h1, prepared["w2t"], preferred_element_type=jnp.float32) + prepared["b2r"]
    h2 = jnp.maximum(h2, 0.0).astype(jnp.bfloat16)
    out = jnp.dot(h2, prepared["w3t"], preferred_element_type=jnp.float32) + prepared["b3r"]
    return out.astype(jnp.bfloat16)


def qnetwork_forward(x, prepared, *, tile_b_max=TILE_B_MAX,
                     min_kernel_batch=MIN_KERNEL_BATCH):
    """Fused QNetwork forward. x: (batch, 30) float32. Returns (batch, action_dim) bf16."""
    batch, in_dim = x.shape
    assert in_dim == prepared["in_dim"]
    action_dim = prepared["action_dim"]

    if batch < min_kernel_batch:
        return _forward_jnp(x, prepared)

    # Row tile: aim for >=2 grid steps (both TCs on v7x), aligned to 256 rows,
    # capped so the pipeline's live set stays small.
    tile_b = min(tile_b_max, _round_up(max((batch + 1) // 2, 1), ROW_ALIGN))
    padded_batch = _round_up(batch, tile_b)
    grid = (padded_batch // tile_b,)

    xb = x.astype(jnp.bfloat16)
    if padded_batch != batch:
        xb = jnp.pad(xb, ((0, padded_batch - batch), (0, 0)))

    flops = 2 * padded_batch * (in_dim * H1 + H1 * HPAD + HPAD * action_dim)
    bytes_accessed = (
        padded_batch * in_dim * 2              # x (bf16)
        + padded_batch * action_dim * 2        # out (bf16)
        + (in_dim * H1 + H1 * HPAD + HPAD * action_dim) * 2   # weights (bf16)
        + (H1 + HPAD + action_dim) * 4         # biases (f32)
    )

    out_padded = pl.pallas_call(
        _mlp_kernel,
        out_shape=jax.ShapeDtypeStruct((padded_batch, action_dim), jnp.bfloat16),
        grid_spec=pltpu.PrefetchScalarGridSpec(
            num_scalar_prefetch=0,
            grid=grid,
            in_specs=[
                pl.BlockSpec((tile_b, in_dim), lambda i: (i, 0)),       # x tile
                pl.BlockSpec((in_dim, H1), lambda i: (0, 0)),           # w1 (VMEM-resident)
                pl.BlockSpec((1, H1), lambda i: (0, 0)),                # b1
                pl.BlockSpec((H1, HPAD), lambda i: (0, 0)),             # w2 (VMEM-resident)
                pl.BlockSpec((1, HPAD), lambda i: (0, 0)),              # b2
                pl.BlockSpec((HPAD, action_dim), lambda i: (0, 0)),     # w3 (VMEM-resident)
                pl.BlockSpec((1, action_dim), lambda i: (0, 0)),        # b3
            ],
            out_specs=pl.BlockSpec((tile_b, action_dim), lambda i: (i, 0)),
        ),
        compiler_params=pltpu.CompilerParams(
            dimension_semantics=("parallel",),
            vmem_limit_bytes=32 * 1024 * 1024,
        ),
        cost_estimate=pl.CostEstimate(
            flops=flops, transcendentals=0, bytes_accessed=bytes_accessed),
    )(xb, prepared["w1t"], prepared["b1r"], prepared["w2t"], prepared["b2r"],
      prepared["w3t"], prepared["b3r"])

    return out_padded[:batch]


def init_params(key, state_dim=30, action_dim=16):
    """Deterministic synthetic init (PyTorch Linear weight shapes: (out, in))."""
    ks = jax.random.split(key, 6)

    def uinit(k, shape, fan_in):
        bound = 1.0 / jnp.sqrt(fan_in)
        return jax.random.uniform(k, shape, jnp.float32, -bound, bound)

    return {
        "w1": uinit(ks[0], (128, state_dim), state_dim),
        "b1": uinit(ks[1], (128,), state_dim),
        "w2": uinit(ks[2], (64, 128), 128),
        "b2": uinit(ks[3], (64,), 128),
        "w3": uinit(ks[4], (action_dim, 64), 64),
        "b3": uinit(ks[5], (action_dim,), 64),
    }


def _reference_f32(x, params):
    h = jnp.maximum(x @ params["w1"].T + params["b1"], 0.0)
    h = jnp.maximum(h @ params["w2"].T + params["b2"], 0.0)
    return h @ params["w3"].T + params["b3"]


if __name__ == "__main__":
    key = jax.random.PRNGKey(0)
    k_x1, k_x2, k_p = jax.random.split(key, 3)

    state_dim = 30     # QNetwork hard-codes input features = 30
    action_dim = 16

    params = init_params(k_p, state_dim=state_dim, action_dim=action_dim)
    prepared = prepare_params(params)

    # --- Pallas-kernel path (batch above the fallback threshold, grid of 2 tiles) ---
    batch_big = 512
    x_big = jax.random.normal(k_x1, (batch_big, state_dim), dtype=jnp.float32)
    out_big = qnetwork_forward(x_big, prepared)
    jax.block_until_ready(out_big)
    assert out_big.shape == (batch_big, action_dim)
    ref_big = _reference_f32(x_big, params)
    err_big = jnp.max(jnp.abs(out_big.astype(jnp.float32) - ref_big))
    assert jnp.allclose(out_big.astype(jnp.float32), ref_big, atol=5e-2, rtol=5e-2), (
        f"kernel path max abs err {err_big}")

    # --- tiny-batch fallback path (acting loop) ---
    batch_small = 8
    x_small = jax.random.normal(k_x2, (batch_small, state_dim), dtype=jnp.float32)
    out_small = qnetwork_forward(x_small, prepared)
    jax.block_until_ready(out_small)
    assert out_small.shape == (batch_small, action_dim)
    ref_small = _reference_f32(x_small, params)
    err_small = jnp.max(jnp.abs(out_small.astype(jnp.float32) - ref_small))
    assert jnp.allclose(out_small.astype(jnp.float32), ref_small, atol=5e-2, rtol=5e-2), (
        f"fallback path max abs err {err_small}")

    print("KERNEL_OK")
</pallas_src>

<mosaic_0001>
module attributes {stable_mosaic.version = 11 : i64} {
  func.func @_mlp_kernel(%arg0: i32, %arg1: memref<256x30xbf16, #tpu.memory_space<vmem>>, %arg2: memref<30x128xbf16, #tpu.memory_space<vmem>>, %arg3: memref<1x128xf32, #tpu.memory_space<vmem>>, %arg4: memref<128x128xbf16, #tpu.memory_space<vmem>>, %arg5: memref<1x128xf32, #tpu.memory_space<vmem>>, %arg6: memref<128x16xbf16, #tpu.memory_space<vmem>>, %arg7: memref<1x16xf32, #tpu.memory_space<vmem>>, %arg8: memref<256x16xbf16, #tpu.memory_space<vmem>>) attributes {dimension_semantics = [#tpu.dimension_semantics<parallel>], iteration_bounds = array<i64: 2>, scalar_prefetch = 0 : i64, scratch_operands = 0 : i64, tpu.core_type = #tpu.core_type<tc>, window_params = [{transform_indices = @transform_0, window_bounds = array<i64: 256, 30>}, {pipeline_mode = #tpu.pipeline_mode<synchronous>, transform_indices = @transform_1, window_bounds = array<i64: 30, 128>}, {pipeline_mode = #tpu.pipeline_mode<synchronous>, transform_indices = @transform_2, window_bounds = array<i64: 1, 128>}, {pipeline_mode = #tpu.pipeline_mode<synchronous>, transform_indices = @transform_3, window_bounds = array<i64: 128, 128>}, {pipeline_mode = #tpu.pipeline_mode<synchronous>, transform_indices = @transform_4, window_bounds = array<i64: 1, 128>}, {pipeline_mode = #tpu.pipeline_mode<synchronous>, transform_indices = @transform_5, window_bounds = array<i64: 128, 16>}, {pipeline_mode = #tpu.pipeline_mode<synchronous>, transform_indices = @transform_6, window_bounds = array<i64: 1, 16>}, {transform_indices = @transform_7, window_bounds = array<i64: 256, 16>}]} {
    %c0 = arith.constant 0 : index
    %c0_0 = arith.constant 0 : index
    %0 = vector.load %arg1[%c0, %c0_0] : memref<256x30xbf16, #tpu.memory_space<vmem>>, vector<256x30xbf16>
    %c0_1 = arith.constant 0 : index
    %c0_2 = arith.constant 0 : index
    %1 = vector.load %arg2[%c0_1, %c0_2] : memref<30x128xbf16, #tpu.memory_space<vmem>>, vector<30x128xbf16>
    %cst = arith.constant dense<0.000000e+00> : vector<256x128xf32>
    %2 = tpu.matmul %0, %1, %cst {dimension_numbers = #tpu.dot_dimension_numbers<[1], [0], [0], [1], [0, 0, 1, 1], [], []>} : vector<256x30xbf16>, vector<30x128xbf16>, vector<256x128xf32> -> vector<256x128xf32>
    %c0_3 = arith.constant 0 : index
    %c0_4 = arith.constant 0 : index
    %3 = vector.load %arg3[%c0_3, %c0_4] : memref<1x128xf32, #tpu.memory_space<vmem>>, vector<1x128xf32>
    %4 = vector.broadcast %3 : vector<1x128xf32> to vector<256x128xf32>
    %5 = arith.addf %2, %4 : vector<256x128xf32>
    %cst_5 = arith.constant 0.000000e+00 : f32
    %6 = vector.broadcast %cst_5 : f32 to vector<256x128xf32>
    %7 = arith.maximumf %5, %6 : vector<256x128xf32>
    %8 = arith.truncf %7 : vector<256x128xf32> to vector<256x128xbf16>
    %c0_6 = arith.constant 0 : index
    %c0_7 = arith.constant 0 : index
    %9 = vector.load %arg4[%c0_6, %c0_7] : memref<128x128xbf16, #tpu.memory_space<vmem>>, vector<128x128xbf16>
    %cst_8 = arith.constant dense<0.000000e+00> : vector<256x128xf32>
    %10 = tpu.matmul %8, %9, %cst_8 {dimension_numbers = #tpu.dot_dimension_numbers<[1], [0], [0], [1], [0, 0, 1, 1], [], []>} : vector<256x128xbf16>, vector<128x128xbf16>, vector<256x128xf32> -> vector<256x128xf32>
    %c0_9 = arith.constant 0 : index
    %c0_10 = arith.constant 0 : index
    %11 = vector.load %arg5[%c0_9, %c0_10] : memref<1x128xf32, #tpu.memory_space<vmem>>, vector<1x128xf32>
    %12 = vector.broadcast %11 : vector<1x128xf32> to vector<256x128xf32>
    %13 = arith.addf %10, %12 : vector<256x128xf32>
    %cst_11 = arith.constant 0.000000e+00 : f32
    %14 = vector.broadcast %cst_11 : f32 to vector<256x128xf32>
    %15 = arith.maximumf %13, %14 : vector<256x128xf32>
    %16 = arith.truncf %15 : vector<256x128xf32> to vector<256x128xbf16>
    %c0_12 = arith.constant 0 : index
    %c0_13 = arith.constant 0 : index
    %17 = vector.load %arg6[%c0_12, %c0_13] : memref<128x16xbf16, #tpu.memory_space<vmem>>, vector<128x16xbf16>
    %cst_14 = arith.constant dense<0.000000e+00> : vector<256x16xf32>
    %18 = tpu.matmul %16, %17, %cst_14 {dimension_numbers = #tpu.dot_dimension_numbers<[1], [0], [0], [1], [0, 0, 1, 1], [], []>} : vector<256x128xbf16>, vector<128x16xbf16>, vector<256x16xf32> -> vector<256x16xf32>
    %c0_15 = arith.constant 0 : index
    %c0_16 = arith.constant 0 : index
    %19 = vector.load %arg7[%c0_15, %c0_16] : memref<1x16xf32, #tpu.memory_space<vmem>>, vector<1x16xf32>
    %20 = vector.broadcast %19 : vector<1x16xf32> to vector<256x16xf32>
    %21 = arith.addf %18, %20 : vector<256x16xf32>
    %22 = arith.truncf %21 : vector<256x16xf32> to vector<256x16xbf16>
    %c0_17 = arith.constant 0 : index
    %c0_18 = arith.constant 0 : index
    %23 = vector.load %arg8[%c0_17, %c0_18] : memref<256x16xbf16, #tpu.memory_space<vmem>>, vector<256x16xbf16>
    tpu.vector_store %arg8[%c0_17, %c0_18], %22 {strides = array<i32>} : memref<256x16xbf16, #tpu.memory_space<vmem>>, vector<256x16xbf16>,
    return
  }
  func.func @transform_0(%arg0: i32) -> (i32, i32) {
    %c0_i32 = arith.constant 0 : i32
    %c0_i32_0 = arith.constant 0 : i32
    return %arg0, %c0_i32 : i32, i32
  }
  func.func @transform_1(%arg0: i32) -> (i32, i32) {
    %c0_i32 = arith.constant 0 : i32
    %c0_i32_0 = arith.constant 0 : i32
    %c0_i32_1 = arith.constant 0 : i32
    return %c0_i32, %c0_i32_0 : i32, i32
  }
  func.func @transform_2(%arg0: i32) -> (i32, i32) {
    %c0_i32 = arith.constant 0 : i32
    %c0_i32_0 = arith.constant 0 : i32
    %c0_i32_1 = arith.constant 0 : i32
    return %c0_i32, %c0_i32_0 : i32, i32
  }
  func.func @transform_3(%arg0: i32) -> (i32, i32) {
    %c0_i32 = arith.constant 0 : i32
    %c0_i32_0 = arith.constant 0 : i32
    %c0_i32_1 = arith.constant 0 : i32
    return %c0_i32, %c0_i32_0 : i32, i32
  }
  func.func @transform_4(%arg0: i32) -> (i32, i32) {
    %c0_i32 = arith.constant 0 : i32
    %c0_i32_0 = arith.constant 0 : i32
    %c0_i32_1 = arith.constant 0 : i32
    return %c0_i32, %c0_i32_0 : i32, i32
  }
  func.func @transform_5(%arg0: i32) -> (i32, i32) {
    %c0_i32 = arith.constant 0 : i32
    %c0_i32_0 = arith.constant 0 : i32
    %c0_i32_1 = arith.constant 0 : i32
    return %c0_i32, %c0_i32_0 : i32, i32
  }
  func.func @transform_6(%arg0: i32) -> (i32, i32) {
    %c0_i32 = arith.constant 0 : i32
    %c0_i32_0 = arith.constant 0 : i32
    %c0_i32_1 = arith.constant 0 : i32
    return %c0_i32, %c0_i32_0 : i32, i32
  }
  func.func @transform_7(%arg0: i32) -> (i32, i32) {
    %c0_i32 = arith.constant 0 : i32
    %c0_i32_0 = arith.constant 0 : i32
    return %arg0, %c0_i32 : i32, i32
  }
}

</mosaic_0001>

<bundles_post_ra>
// kernel: tpu_custom_call.1
= control target key start
LH: loop header
LB: loop body
LE: loop exit
PB: predicated region body
PF: predicated region fallthrough
CT: control target
= control target key end

     0   :  { %s1830_s24 = smov 0   ;;  %s2125_s0 = inlined_call_operand.vmem [shape: bf16[512,30], index: 0, kind: input, shape index: {}]   ;;  %s2126_s1 = inlined_call_operand.vmem [shape: bf16[30,128], index: 1, kind: input, shape index: {}]   ;;  %s2127_s2 = inlined_call_operand.vmem [shape: f32[1,128], index: 2, kind: input, shape index: {}]   ;;  %s2128_s3 = inlined_call_operand.vmem [shape: bf16[128,128], index: 3, kind: input, shape index: {}]   ;;  %s2129_s4 = inlined_call_operand.vmem [shape: f32[1,128], index: 4, kind: input, shape index: {}]   ;;  %s2130_s5 = inlined_call_operand.vmem [shape: bf16[128,16], index: 5, kind: input, shape index: {}]   ;;  %s2131_s6 = inlined_call_operand.vmem [shape: f32[1,16], index: 6, kind: input, shape index: {}]   ;;  %s2132_s7 = inlined_call_operand.vmem [shape: bf16[512,16], index: 7, kind: output, shape index: {}]  }
   0x1 LB: > { %s1408_s25 = sadd.s32 4294967295, %s1788_s24   ;;  %p1412_p0 = scmp.ge.s32.totalorder %s1788_s24, 1  ;;  %s1788_s24 = sphi %s1830_s24, %s17_s24  }
   0x2   : > { %p238_p1 = scmp.lt.s32.totalorder %s1788_s24, 3 }
   0x4   : > { %p239_p2 = pnand %p1412_p0, %p238_p1 }
   0x5   : > { %v1748_v0 = vld [vmem:[%s2126_s1] sm:$0xff] (!%p239_p2)   ;;  %vm466_vm0 = vcmask (!%p239_p2), 1046528   ;;  %v1749_v1 = vld [vmem:[%s2126_s1 + $0x8] sm:$0x7f] (!%p239_p2)   ;;  %s1413_s30 = sshll.u32 (!%p239_p2), %s1408_s25, 5  ;;  %vm417_vm1 = vcmask (!%p239_p2), 244736  }
   0x6   : > { %242 = sbr.rel (%p239_p2) target bundleno = 738 (0x2e2), region = 48  ;;  %1602 = vmatprep.subr.bf16.mxu0 (!%p239_p2), %v1748_v0  ;;  %1734 = vmatprep.subr.bf16.mxu1 (!%p239_p2), %v1748_v0  ;;  %v468_v2 = vsel (!%p239_p2), %vm466_vm0, %v1749_v1, 0  ;;  %p271_p3 = scmp.lt.s32.totalorder (!%p239_p2), %s1413_s30, 63  ;;  %v1766_v3 = vld [vmem:[%s2128_s3] sm:$0xff] (!%p239_p2)   ;;  %v1767_v10 = vld [vmem:[%s2128_s3 + $0x8] sm:$0xff] (!%p239_p2)   ;;  %v1768_v13 = vld [vmem:[%s2128_s3 + $0x10] sm:$0xff] (!%p239_p2)  }
   0x7   : > { %1603 = vmatpush3.bf16.msra.mxu0 (!%p239_p2), %v1748_v0  ;;  %1736 = vmatpush3.bf16.msra.mxu1 (!%p239_p2), %v1748_v0  ;;  %v1769_v18 = vld [vmem:[%s2128_s3 + $0x18] sm:$0xff] (!%p239_p2)   ;;  %v1770_v19 = vld [vmem:[%s2128_s3 + $0x20] sm:$0xff] (!%p239_p2)   ;;  %v1771_v23 = vld [vmem:[%s2128_s3 + $0x28] sm:$0xff] (!%p239_p2)   ;;  %vm1319_vm2 = vcmask (!%p239_p2), 125952  }
   0x8   : > { %1738 = vmatprep.subr.msk.bf16.mxu0 (!%p239_p2), %vm466_vm0, %v1749_v1  ;;  %1739 = vmatprep.subr.msk.bf16.mxu1 (!%p239_p2), %vm466_vm0, %v1749_v1  ;;  %v1772_v25 = vld [vmem:[%s2128_s3 + $0x30] sm:$0xff] (!%p239_p2)   ;;  %v1773_v26 = vld [vmem:[%s2128_s3 + $0x38] sm:$0xff] (!%p239_p2)   ;;  %v1774_v27 = vld [vmem:[%s2130_s5] sm:$0xff] (!%p239_p2)  }
   0x9   : > { %v1775_v28 = vld [vmem:[%s2130_s5 + $0x8] sm:$0xff] (!%p239_p2)   ;;  %v1776_v29 = vld [vmem:[%s2130_s5 + $0x10] sm:$0xff] (!%p239_p2)   ;;  %v1777_v30 = vld [vmem:[%s2130_s5 + $0x18] sm:$0xff] (!%p239_p2)  }
   0xa   : > { %v1778_v31 = vld [vmem:[%s2130_s5 + $0x20] sm:$0xff] (!%p239_p2)   ;;  %v1779_v32 = vld [vmem:[%s2130_s5 + $0x28] sm:$0xff] (!%p239_p2)  }
   0xb   : > { %1605 = vmatpush3.bf16.msra.mxu0 (!%p239_p2), %v468_v2  ;;  %1737 = vmatpush3.bf16.msra.mxu1 (!%p239_p2), %v468_v2  ;;  %v1931_v33 = vld [vmem:[%s2127_s2] ss:$0 sm:$0xff] (!%p239_p2) }
   0xc   : > { %1638 = vmatprep.subr.bf16.mxu1 (!%p239_p2), %v1766_v3  ;;  %1686 = vmatprep.subr.bf16.mxu0 (!%p239_p2), %v1774_v27 }
   0xd   : > { %s2134_s30 = smov (!%p271_p3, %s1413_s30), 63 }
   0xe   : > { %s1414_s10 = sshll.u32 %s2134_s30, 2 }
   0xf   : > { %s1855_s13 = scalar_lea.vmem %s2125_s0, %s1414_s10  ;;  %s2025_s12 = scalar_lea.vmem %s2132_s7, %s1414_s10 }
  0x10   : > { %v1750_v4 = vld [vmem:[%s1855_s13] sm:$0xff]   ;;  %v1751_v5 = vld [vmem:[%s1855_s13 + $0x8] sm:$0xff]   ;;  %v1752_v6 = vld [vmem:[%s1855_s13 + $0x10] sm:$0xff]  }
  0x11   : > { %1606 = vmatprep.mubr.msk.bf16.mxu0 %vm417_vm1, %v1750_v4  ;;  %v1753_v7 = vld [vmem:[%s1855_s13 + $0x18] sm:$0xff]   ;;  %v1754_v8 = vld [vmem:[%s1855_s13 + $0x20] sm:$0xff]   ;;  %v1759_v11 = vld [vmem:[%s1855_s13 + $0x48] sm:$0xff]  }
  0x12   : > { %1607 = vmatmul.mubr.msk.bf16.vlgmr.msra.gmra.mrb[0].mxu0 %vm417_vm1, %v1751_v5  ;;  %v1758_v9 = vld [vmem:[%s1855_s13 + $0x40] sm:$0xff]   ;;  %v1760_v12 = vld [vmem:[%s1855_s13 + $0x50] sm:$0xff]   ;;  %v1755_v14 = vld [vmem:[%s1855_s13 + $0x28] sm:$0xff]  }
  0x13   : > { %1610 = vmatprep.mubr.msk.bf16.mxu0 %vm417_vm1, %v1752_v6  ;;  %1622 = vmatprep.mubr.msk.bf16.mxu1 %vm417_vm1, %v1758_v9  ;;  %v1756_v15 = vld [vmem:[%s1855_s13 + $0x30] sm:$0xff]   ;;  %v1761_v16 = vld [vmem:[%s1855_s13 + $0x58] sm:$0xff]   ;;  %v1762_v17 = vld [vmem:[%s1855_s13 + $0x60] sm:$0xff]  }
  0x14   : > { %1623 = vmatmul.mubr.msk.bf16.vlgmr.msra.gmra.mrb[0].mxu1 %vm417_vm1, %v1759_v11  ;;  %v1757_v20 = vld [vmem:[%s1855_s13 + $0x38] sm:$0xff]   ;;  %v1763_v21 = vld [vmem:[%s1855_s13 + $0x68] sm:$0xff]   ;;  %v1764_v22 = vld [vmem:[%s1855_s13 + $0x70] sm:$0xff]   ;;  %1687 = vmatpush3.bf16.msra.mxu0 %v1774_v27 }
  0x15   : > { %1626 = vmatprep.mubr.msk.bf16.mxu1 %vm417_vm1, %v1760_v12  ;;  %1639 = vmatpush3.bf16.msra.mxu1 %v1766_v3  ;;  %v1765_v24 = vld [vmem:[%s1855_s13 + $0x78] sm:$0xff]  }
  0x16   : > { %1640 = vmatprep.subr.bf16.mxu1 %v1767_v10  ;;  %1688 = vmatprep.subr.bf16.mxu0 %v1775_v28 }
  0x18   : > { %1689 = vmatpush3.bf16.msra.mxu0 %v1775_v28 }
  0x19   : > { %1641 = vmatpush3.bf16.msra.mxu1 %v1767_v10  ;;  %1690 = vmatprep.subr.bf16.mxu0 %v1776_v29 }
  0x1a   : > { %1611 = vmatmul.mubr.msk.bf16.gmra.mrb[4].mxu0 %vm417_vm1, %v1753_v7  ;;  %1642 = vmatprep.subr.bf16.mxu1 %v1768_v13 }
  0x1b   : > { %1614 = vmatprep.mubr.msk.bf16.mxu0 %vm417_vm1, %v1754_v8 }
  0x1c   : > { %1627 = vmatmul.mubr.msk.bf16.gmra.mrb[4].mxu1 %vm417_vm1, %v1761_v16  ;;  %1691 = vmatpush3.bf16.msra.mxu0 %v1776_v29 }
  0x1d   : > { %1630 = vmatprep.mubr.msk.bf16.mxu1 %vm417_vm1, %v1762_v17  ;;  %1643 = vmatpush3.bf16.msra.mxu1 %v1768_v13 }
  0x1e   : > { %1644 = vmatprep.subr.bf16.mxu1 %v1769_v18  ;;  %1692 = vmatprep.subr.bf16.mxu0 %v1777_v30 }
  0x20   : > { %1693 = vmatpush3.bf16.msra.mxu0 %v1777_v30 }
  0x21   : > { %1645 = vmatpush3.bf16.msra.mxu1 %v1769_v18  ;;  %1694 = vmatprep.subr.bf16.mxu0 %v1778_v31 }
  0x22   : > { %1615 = vmatmul.mubr.msk.bf16.gmra.mrb[8].mxu0 %vm417_vm1, %v1755_v14  ;;  %1646 = vmatprep.subr.bf16.mxu1 %v1770_v19 }
  0x23   : > { %1618 = vmatprep.mubr.msk.bf16.mxu0 %vm417_vm1, %v1756_v15 }
  0x24   : > { %1631 = vmatmul.mubr.msk.bf16.gmra.mrb[8].mxu1 %vm417_vm1, %v1763_v21  ;;  %1695 = vmatpush3.bf16.msra.mxu0 %v1778_v31 }
  0x25   : > { %1634 = vmatprep.mubr.msk.bf16.mxu1 %vm417_vm1, %v1764_v22  ;;  %1647 = vmatpush3.bf16.msra.mxu1 %v1770_v19 }
  0x26   : > { %1648 = vmatprep.subr.bf16.mxu1 %v1771_v23  ;;  %1696 = vmatprep.subr.bf16.mxu0 %v1779_v32 }
  0x28   : > { %1697 = vmatpush3.bf16.msra.mxu0 %v1779_v32 }
  0x29   : > { %1649 = vmatpush3.bf16.msra.mxu1 %v1771_v23 }
  0x2a   : > { %1619 = vmatmul.mubr.msk.bf16.gmra.mrb[12].mxu0 %vm417_vm1, %v1757_v20  ;;  %1650 = vmatprep.subr.bf16.mxu1 %v1772_v25 }
  0x2c   : > { %1635 = vmatmul.mubr.msk.bf16.gmra.mrb[12].mxu1 %vm417_vm1, %v1765_v24 }
  0x2d   : > { %1651 = vmatpush3.bf16.msra.mxu1 %v1772_v25 }
  0x2e   : > { %1652 = vmatprep.subr.bf16.mxu1 %v1773_v26 }
  0x31   : > { %1653 = vmatpush3.bf16.msra.mxu1 %v1773_v26 }
  0xe5   : > { %v1608_v34 = vpop.f32.mrb[0].mxu0 }
  0xe6   : > { %v513_v35 = vadd.f32 %v1608_v34, %v1931_v33  ;;  %v504_v36 = vpop.f32.mrb[1].mxu0 }
  0xe7   : > { %v505_v37 = vadd.f32 %v1931_v33, %v504_v36  ;;  %v1609_v38 = vpop.f32.mrb[2].mxu0  ;;  %v1624_v49 = vpop.f32.mrb[0].mxu1 }
  0xe8   : > { %v516_v39 = vadd.f32 %v1609_v38, %v1931_v33  ;;  %v507_v40 = vpop.f32.mrb[3].mxu0  ;;  %v633_v42 = vmax.f32 %v513_v35, 0.0  ;;  %v577_v52 = vadd.f32 %v1624_v49, %v1931_v33  ;;  %v568_v53 = vpop.f32.mrb[1].mxu1 }
  0xe9   : > { %v508_v41 = vadd.f32 %v1931_v33, %v507_v40  ;;  %v631_v44 = vmax.f32 %v505_v37, 0.0  ;;  %v569_v56 = vadd.f32 %v1931_v33, %v568_v53  ;;  %v1625_v57 = vpop.f32.mrb[2].mxu1 }
  0xea   : > { %v634_v43 = vmax.f32 %v516_v39, 0.0  ;;  %v649_v60 = vmax.f32 %v577_v52, 0.0  ;;  %v580_v61 = vadd.f32 %v1625_v57, %v1931_v33  ;;  %v571_v62 = vpop.f32.mrb[3].mxu1 }
  0xeb   : > { %v632_v45 = vmax.f32 %v508_v41, 0.0  ;;  %v647_v0 = vmax.f32 %v569_v56, 0.0  ;;  %v572_v1 = vadd.f32 %v1931_v33, %v571_v62 }
  0xec   : > { %v664_v46 = vpack.c.bf16 %v634_v43, %v633_v42  ;;  %v650_v4 = vmax.f32 %v580_v61, 0.0 }
  0xed   : > { %v663_v47 = vpack.c.bf16 %v632_v45, %v631_v44  ;;  %v1612_v48 = vpop.f32.mrb[4].mxu0  ;;  %v648_v7 = vmax.f32 %v572_v1, 0.0 }
  0xee   : > { %v529_v50 = vadd.f32 %v1612_v48, %v1931_v33  ;;  %v520_v51 = vpop.f32.mrb[5].mxu0  ;;  %v1945_v9 = vpack.c.bf16 %v650_v4, %v649_v60 }
  0xef   : > { %v521_v54 = vadd.f32 %v1931_v33, %v520_v51  ;;  %v1613_v55 = vpop.f32.mrb[6].mxu0  ;;  %1654 = vmatprep.mubr.bf16.mxu1 %v663_v47  ;;  %v1947_v12 = vpack.c.bf16 %v648_v7, %v647_v0  ;;  %v1628_v13 = vpop.f32.mrb[4].mxu1 }
  0xf0   : > { %v532_v58 = vadd.f32 %v1613_v55, %v1931_v33  ;;  %v523_v59 = vpop.f32.mrb[7].mxu0  ;;  %1655 = vmatmul.mubr.bf16.vlgmr.msra.gmra.mrb[16].mxu1 %v664_v46  ;;  %v637_v2 = vmax.f32 %v529_v50, 0.0  ;;  %v593_v16 = vadd.f32 %v1628_v13, %v1931_v33  ;;  %v584_v17 = vpop.f32.mrb[5].mxu1 }
  0xf1   : > { %v524_v63 = vadd.f32 %v1931_v33, %v523_v59  ;;  %v635_v5 = vmax.f32 %v521_v54, 0.0  ;;  %v585_v20 = vadd.f32 %v1931_v33, %v584_v17  ;;  %v1629_v21 = vpop.f32.mrb[6].mxu1 }
  0xf2   : > { %v638_v3 = vmax.f32 %v532_v58, 0.0  ;;  %v653_v24 = vmax.f32 %v593_v16, 0.0  ;;  %v596_v25 = vadd.f32 %v1629_v21, %v1931_v33  ;;  %v587_v26 = vpop.f32.mrb[7].mxu1  ;;  %v1780_v21 = vld [vmem:[%s2130_s5 + $0x30] sm:$0xff]  }
  0xf3   : > { %v636_v6 = vmax.f32 %v524_v63, 0.0  ;;  %v651_v28 = vmax.f32 %v585_v20, 0.0  ;;  %v588_v29 = vadd.f32 %v1931_v33, %v587_v26  ;;  %1698 = vmatprep.subr.bf16.mxu0 %v1780_v21 }
  0xf4   : > { %v666_v8 = vpack.c.bf16 %v638_v3, %v637_v2  ;;  %v654_v32 = vmax.f32 %v596_v25, 0.0  ;;  %1699 = vmatpush3.bf16.msra.mxu0 %v1780_v21 }
  0xf5   : > { %v665_v10 = vpack.c.bf16 %v636_v6, %v635_v5  ;;  %v1616_v11 = vpop.f32.mrb[8].mxu0  ;;  %v652_v36 = vmax.f32 %v588_v29, 0.0 }
  0xf6   : > { %v545_v14 = vadd.f32 %v1616_v11, %v1931_v33  ;;  %v536_v15 = vpop.f32.mrb[9].mxu0  ;;  %v674_v38 = vpack.c.bf16 %v654_v32, %v653_v24 }
  0xf7   : > { %v537_v18 = vadd.f32 %v1931_v33, %v536_v15  ;;  %v1617_v19 = vpop.f32.mrb[10].mxu0  ;;  %1658 = vmatprep.mubr.bf16.mxu1 %v665_v10  ;;  %v673_v41 = vpack.c.bf16 %v652_v36, %v651_v28  ;;  %v1632_v42 = vpop.f32.mrb[8].mxu1 }
  0xf8   : > { %v548_v22 = vadd.f32 %v1617_v19, %v1931_v33  ;;  %v539_v23 = vpop.f32.mrb[11].mxu0  ;;  %1659 = vmatmul.mubr.bf16.gmra.mrb[20].mxu1 %v666_v8  ;;  %v641_v30 = vmax.f32 %v545_v14, 0.0  ;;  %v609_v45 = vadd.f32 %v1632_v42, %v1931_v33  ;;  %v600_v46 = vpop.f32.mrb[9].mxu1 }
  0xf9   : > { %v540_v27 = vadd.f32 %v1931_v33, %v539_v23  ;;  %v639_v34 = vmax.f32 %v537_v18, 0.0  ;;  %v601_v49 = vadd.f32 %v1931_v33, %v600_v46  ;;  %v1633_v50 = vpop.f32.mrb[10].mxu1 }
  0xfa   : > { %v642_v31 = vmax.f32 %v548_v22, 0.0  ;;  %v657_v53 = vmax.f32 %v609_v45, 0.0  ;;  %v612_v54 = vadd.f32 %v1633_v50, %v1931_v33  ;;  %v603_v55 = vpop.f32.mrb[11].mxu1 }
  0xfb   : > { %v640_v35 = vmax.f32 %v540_v27, 0.0  ;;  %v655_v57 = vmax.f32 %v601_v49, 0.0  ;;  %v604_v58 = vadd.f32 %v1931_v33, %v603_v55 }
  0xfc   : > { %v668_v37 = vpack.c.bf16 %v642_v31, %v641_v30  ;;  %v658_v61 = vmax.f32 %v612_v54, 0.0 }
  0xfd   : > { %v667_v39 = vpack.c.bf16 %v640_v35, %v639_v34  ;;  %v1620_v40 = vpop.f32.mrb[12].mxu0  ;;  %v656_v0 = vmax.f32 %v604_v58, 0.0 }
  0xfe   : > { %v561_v43 = vadd.f32 %v1620_v40, %v1931_v33  ;;  %v552_v44 = vpop.f32.mrb[13].mxu0  ;;  %v676_v2 = vpack.c.bf16 %v658_v61, %v657_v53 }
  0xff   : > { %v553_v47 = vadd.f32 %v1931_v33, %v552_v44  ;;  %v1621_v48 = vpop.f32.mrb[14].mxu0  ;;  %1662 = vmatprep.mubr.bf16.mxu1 %v667_v39  ;;  %v675_v4 = vpack.c.bf16 %v656_v0, %v655_v57  ;;  %v1636_v5 = vpop.f32.mrb[12].mxu1 }
 0x100   : > { %v564_v51 = vadd.f32 %v1621_v48, %v1931_v33  ;;  %v555_v52 = vpop.f32.mrb[15].mxu0  ;;  %1663 = vmatmul.mubr.bf16.gmra.mrb[24].mxu1 %v668_v37  ;;  %v645_v59 = vmax.f32 %v561_v43, 0.0  ;;  %v625_v6 = vadd.f32 %v1636_v5, %v1931_v33  ;;  %v616_v7 = vpop.f32.mrb[13].mxu1 }
 0x101   : > { %v556_v56 = vadd.f32 %v1931_v33, %v555_v52  ;;  %v643_v62 = vmax.f32 %v553_v47, 0.0  ;;  %v617_v8 = vadd.f32 %v1931_v33, %v616_v7  ;;  %v1637_v10 = vpop.f32.mrb[14].mxu1 }
 0x102   : > { %v646_v60 = vmax.f32 %v564_v51, 0.0  ;;  %v661_v11 = vmax.f32 %v625_v6, 0.0  ;;  %v628_v13 = vadd.f32 %v1637_v10, %v1931_v33  ;;  %v619_v14 = vpop.f32.mrb[15].mxu1 }
 0x103   : > { %v644_v63 = vmax.f32 %v556_v56, 0.0  ;;  %v659_v15 = vmax.f32 %v617_v8, 0.0  ;;  %v620_v16 = vadd.f32 %v1931_v33, %v619_v14  ;;  %v1781_v33 = vld [vmem:[%s2130_s5 + $0x38] sm:$0xff]  }
 0x104   : > { %v670_v1 = vpack.c.bf16 %v646_v60, %v645_v59  ;;  %v662_v17 = vmax.f32 %v628_v13, 0.0  ;;  %1700 = vmatprep.subr.bf16.mxu0 %v1781_v33 }
 0x105   : > { %v669_v3 = vpack.c.bf16 %v644_v63, %v643_v62  ;;  %v660_v18 = vmax.f32 %v620_v16, 0.0  ;;  %1701 = vmatpush3.bf16.msra.mxu0 %v1781_v33 }
 0x106   : > { %v678_v19 = vpack.c.bf16 %v662_v17, %v661_v11 }
 0x107   : > { %1666 = vmatprep.mubr.bf16.mxu1 %v669_v3  ;;  %v677_v20 = vpack.c.bf16 %v660_v18, %v659_v15 }
 0x108   : > { %1667 = vmatmul.mubr.bf16.gmra.mrb[28].mxu1 %v670_v1 }
 0x109   : > { %1670 = vmatprep.mubr.bf16.mxu1 %v1947_v12 }
 0x110   : > { %1671 = vmatmul.mubr.bf16.gmra.mrb[32].mxu1 %v1945_v9  ;;  %v1980_v9 = vld [vmem:[%s2129_s4] ss:$0 sm:$0xff] }
 0x111   : > { %1674 = vmatprep.mubr.bf16.mxu1 %v673_v41 }
 0x118   : > { %1675 = vmatmul.mubr.bf16.gmra.mrb[36].mxu1 %v674_v38 }
 0x119   : > { %1678 = vmatprep.mubr.bf16.mxu1 %v675_v4 }
 0x120   : > { %1679 = vmatmul.mubr.bf16.gmra.mrb[40].mxu1 %v676_v2 }
 0x121   : > { %1682 = vmatprep.mubr.bf16.mxu1 %v677_v20 }
 0x128   : > { %1683 = vmatmul.mubr.bf16.gmra.mrb[44].mxu1 %v678_v19 }
 0x1c3   : > { %v1656_v12 = vpop.f32.mrb[16].mxu1 }
 0x1c4   : > { %v793_v22 = vadd.f32 %v1656_v12, %v1980_v9  ;;  %v784_v23 = vpop.f32.mrb[17].mxu1 }
 0x1c5   : > { %v785_v24 = vadd.f32 %v1980_v9, %v784_v23  ;;  %v1657_v25 = vpop.f32.mrb[18].mxu1 }
 0x1c6   : > { %v796_v26 = vadd.f32 %v1657_v25, %v1980_v9  ;;  %v787_v27 = vpop.f32.mrb[19].mxu1  ;;  %v913_v29 = vmax.f32 %v793_v22, 0.0 }
 0x1c7   : > { %v788_v28 = vadd.f32 %v1980_v9, %v787_v27  ;;  %v911_v31 = vmax.f32 %v785_v24, 0.0 }
 0x1c8   : > { %v914_v30 = vmax.f32 %v796_v26, 0.0 }
 0x1c9   : > { %v912_v32 = vmax.f32 %v788_v28, 0.0 }
 0x1ca   : > { %v944_v34 = vpack.c.bf16 %v914_v30, %v913_v29 }
 0x1cb   : > { %v943_v35 = vpack.c.bf16 %v912_v32, %v911_v31  ;;  %v1660_v36 = vpop.f32.mrb[20].mxu1 }
 0x1cc   : > { %v809_v37 = vadd.f32 %v1660_v36, %v1980_v9  ;;  %v800_v38 = vpop.f32.mrb[21].mxu1 }
 0x1cd   : > { %v801_v39 = vadd.f32 %v1980_v9, %v800_v38  ;;  %v1661_v40 = vpop.f32.mrb[22].mxu1  ;;  %1702 = vmatprep.mubr.bf16.mxu0 %v943_v35 }
 0x1ce   : > { %v812_v41 = vadd.f32 %v1661_v40, %v1980_v9  ;;  %v803_v42 = vpop.f32.mrb[23].mxu1  ;;  %1703 = vmatmul.mubr.bf16.vlgmr.msra.gmra.mrb[16].mxu0 %v944_v34  ;;  %v917_v44 = vmax.f32 %v809_v37, 0.0 }
 0x1cf   : > { %v804_v43 = vadd.f32 %v1980_v9, %v803_v42  ;;  %v915_v46 = vmax.f32 %v801_v39, 0.0 }
 0x1d0   : > { %v918_v45 = vmax.f32 %v812_v41, 0.0 }
 0x1d1   : > { %v916_v47 = vmax.f32 %v804_v43, 0.0 }
 0x1d2   : > { %v946_v48 = vpack.c.bf16 %v918_v45, %v917_v44 }
 0x1d3   : > { %v945_v49 = vpack.c.bf16 %v916_v47, %v915_v46  ;;  %v1664_v50 = vpop.f32.mrb[24].mxu1 }
 0x1d4   : > { %v825_v51 = vadd.f32 %v1664_v50, %v1980_v9  ;;  %v816_v52 = vpop.f32.mrb[25].mxu1 }
 0x1d5   : > { %v817_v53 = vadd.f32 %v1980_v9, %v816_v52  ;;  %v1665_v54 = vpop.f32.mrb[26].mxu1  ;;  %1706 = vmatprep.mubr.bf16.mxu0 %v945_v49 }
 0x1d6   : > { %v828_v55 = vadd.f32 %v1665_v54, %v1980_v9  ;;  %v819_v56 = vpop.f32.mrb[27].mxu1  ;;  %1707 = vmatmul.mubr.bf16.gmra.mrb[20].mxu0 %v946_v48  ;;  %v921_v58 = vmax.f32 %v825_v51, 0.0 }
 0x1d7   : > { %v820_v57 = vadd.f32 %v1980_v9, %v819_v56  ;;  %v919_v60 = vmax.f32 %v817_v53, 0.0 }
 0x1d8   : > { %v922_v59 = vmax.f32 %v828_v55, 0.0 }
 0x1d9   : > { %v920_v61 = vmax.f32 %v820_v57, 0.0 }
 0x1da   : > { %v948_v62 = vpack.c.bf16 %v922_v59, %v921_v58 }
 0x1db   : > { %v947_v63 = vpack.c.bf16 %v920_v61, %v919_v60  ;;  %v1668_v0 = vpop.f32.mrb[28].mxu1 }
 0x1dc   : > { %v841_v1 = vadd.f32 %v1668_v0, %v1980_v9  ;;  %v832_v2 = vpop.f32.mrb[29].mxu1 }
 0x1dd   : > { %v833_v3 = vadd.f32 %v1980_v9, %v832_v2  ;;  %v1669_v4 = vpop.f32.mrb[30].mxu1  ;;  %1710 = vmatprep.mubr.bf16.mxu0 %v947_v63 }
 0x1de   : > { %v844_v5 = vadd.f32 %v1669_v4, %v1980_v9  ;;  %v835_v6 = vpop.f32.mrb[31].mxu1  ;;  %1711 = vmatmul.mubr.bf16.gmra.mrb[24].mxu0 %v948_v62  ;;  %v925_v8 = vmax.f32 %v841_v1, 0.0 }
 0x1df   : > { %v836_v7 = vadd.f32 %v1980_v9, %v835_v6  ;;  %v923_v11 = vmax.f32 %v833_v3, 0.0 }
 0x1e0   : > { %v926_v10 = vmax.f32 %v844_v5, 0.0 }
 0x1e1   : > { %v924_v13 = vmax.f32 %v836_v7, 0.0  ;;  %v2017_v7 = vld [vmem:[%s2131_s6] ss:$0 sm:$0xff] }
 0x1e2   : > { %v950_v14 = vpack.c.bf16 %v926_v10, %v925_v8 }
 0x1e3   : > { %v949_v15 = vpack.c.bf16 %v924_v13, %v923_v11  ;;  %v1672_v16 = vpop.f32.mrb[32].mxu1 }
 0x1e4   : > { %v857_v17 = vadd.f32 %v1672_v16, %v1980_v9  ;;  %v848_v18 = vpop.f32.mrb[33].mxu1 }
 0x1e5   : > { %v849_v19 = vadd.f32 %v1980_v9, %v848_v18  ;;  %v1673_v20 = vpop.f32.mrb[34].mxu1  ;;  %1714 = vmatprep.mubr.bf16.mxu0 %v949_v15 }
 0x1e6   : > { %v860_v21 = vadd.f32 %v1673_v20, %v1980_v9  ;;  %v851_v33 = vpop.f32.mrb[35].mxu1  ;;  %1715 = vmatmul.mubr.bf16.gmra.mrb[28].mxu0 %v950_v14  ;;  %v929_v22 = vmax.f32 %v857_v17, 0.0 }
 0x1e7   : > { %v852_v12 = vadd.f32 %v1980_v9, %v851_v33  ;;  %v927_v24 = vmax.f32 %v849_v19, 0.0 }
 0x1e8   : > { %v930_v23 = vmax.f32 %v860_v21, 0.0 }
 0x1e9   : > { %v928_v25 = vmax.f32 %v852_v12, 0.0 }
 0x1ea   : > { %v952_v26 = vpack.c.bf16 %v930_v23, %v929_v22 }
 0x1eb   : > { %v951_v27 = vpack.c.bf16 %v928_v25, %v927_v24  ;;  %v1676_v28 = vpop.f32.mrb[36].mxu1 }
 0x1ec   : > { %v873_v29 = vadd.f32 %v1676_v28, %v1980_v9  ;;  %v864_v30 = vpop.f32.mrb[37].mxu1 }
 0x1ed   : > { %v865_v31 = vadd.f32 %v1980_v9, %v864_v30  ;;  %v1677_v32 = vpop.f32.mrb[38].mxu1  ;;  %1718 = vmatprep.mubr.bf16.mxu0 %v951_v27 }
 0x1ee   : > { %v876_v34 = vadd.f32 %v1677_v32, %v1980_v9  ;;  %v867_v35 = vpop.f32.mrb[39].mxu1  ;;  %1719 = vmatmul.mubr.bf16.gmra.mrb[32].mxu0 %v952_v26  ;;  %v933_v37 = vmax.f32 %v873_v29, 0.0 }
 0x1ef   : > { %v868_v36 = vadd.f32 %v1980_v9, %v867_v35  ;;  %v931_v39 = vmax.f32 %v865_v31, 0.0 }
 0x1f0   : > { %v934_v38 = vmax.f32 %v876_v34, 0.0 }
 0x1f1   : > { %v932_v40 = vmax.f32 %v868_v36, 0.0 }
 0x1f2   : > { %v954_v41 = vpack.c.bf16 %v934_v38, %v933_v37 }
 0x1f3   : > { %v953_v42 = vpack.c.bf16 %v932_v40, %v931_v39  ;;  %v1680_v43 = vpop.f32.mrb[40].mxu1 }
 0x1f4   : > { %v889_v44 = vadd.f32 %v1680_v43, %v1980_v9  ;;  %v880_v45 = vpop.f32.mrb[41].mxu1 }
 0x1f5   : > { %v881_v46 = vadd.f32 %v1980_v9, %v880_v45  ;;  %v1681_v47 = vpop.f32.mrb[42].mxu1  ;;  %1722 = vmatprep.mubr.bf16.mxu0 %v953_v42 }
 0x1f6   : > { %v892_v48 = vadd.f32 %v1681_v47, %v1980_v9  ;;  %v883_v49 = vpop.f32.mrb[43].mxu1  ;;  %1723 = vmatmul.mubr.bf16.gmra.mrb[36].mxu0 %v954_v41  ;;  %v937_v51 = vmax.f32 %v889_v44, 0.0 }
 0x1f7   : > { %v884_v50 = vadd.f32 %v1980_v9, %v883_v49  ;;  %v935_v53 = vmax.f32 %v881_v46, 0.0 }
 0x1f8   : > { %v938_v52 = vmax.f32 %v892_v48, 0.0 }
 0x1f9   : > { %v936_v54 = vmax.f32 %v884_v50, 0.0 }
 0x1fa   : > { %v956_v55 = vpack.c.bf16 %v938_v52, %v937_v51 }
 0x1fb   : > { %v955_v56 = vpack.c.bf16 %v936_v54, %v935_v53  ;;  %v1684_v57 = vpop.f32.mrb[44].mxu1 }
 0x1fc   : > { %v905_v58 = vadd.f32 %v1684_v57, %v1980_v9  ;;  %v896_v59 = vpop.f32.mrb[45].mxu1 }
 0x1fd   : > { %v897_v60 = vadd.f32 %v1980_v9, %v896_v59  ;;  %v1685_v61 = vpop.f32.mrb[46].mxu1  ;;  %1726 = vmatprep.mubr.bf16.mxu0 %v955_v56 }
 0x1fe   : > { %v908_v62 = vadd.f32 %v1685_v61, %v1980_v9  ;;  %v899_v63 = vpop.f32.mrb[47].mxu1  ;;  %1727 = vmatmul.mubr.bf16.gmra.mrb[40].mxu0 %v956_v55  ;;  %v941_v1 = vmax.f32 %v905_v58, 0.0 }
 0x1ff   : > { %v900_v0 = vadd.f32 %v1980_v9, %v899_v63  ;;  %v939_v3 = vmax.f32 %v897_v60, 0.0 }
 0x200   : > { %v942_v2 = vmax.f32 %v908_v62, 0.0 }
 0x201   : > { %v940_v4 = vmax.f32 %v900_v0, 0.0 }
 0x202   : > { %v958_v5 = vpack.c.bf16 %v942_v2, %v941_v1 }
 0x203   : > { %v957_v6 = vpack.c.bf16 %v940_v4, %v939_v3 }
 0x205   : > { %1730 = vmatprep.mubr.bf16.mxu0 %v957_v6 }
 0x206   : > { %1731 = vmatmul.mubr.bf16.gmra.mrb[44].mxu0 %v958_v5 }
 0x2a1   : > { %v1704_v8 = vpop.f32.mrb[16].mxu0 }
 0x2a2   : > { %v1073_v10 = vadd.f32 %v1704_v8, %v2017_v7  ;;  %v1064_v11 = vpop.f32.mrb[17].mxu0 }
 0x2a3   : > { %v1065_v9 = vadd.f32 %v2017_v7, %v1064_v11  ;;  %v1705_v13 = vpop.f32.mrb[18].mxu0 }
 0x2a4   : > { %v1506_v14 = vpack.c.bf16 %v1073_v10, %v1073_v10  ;;  %v1076_v15 = vadd.f32 %v1705_v13, %v2017_v7  ;;  %v1067_v16 = vpop.f32.mrb[19].mxu0 }
 0x2a5   : > { %v1504_v17 = vpack.c.bf16 %v1065_v9, %v1065_v9  ;;  %v1068_v18 = vadd.f32 %v2017_v7, %v1067_v16 }
 0x2a6   : > { %1322 = vst.msk [vmem:[%s2025_s12 + $0x8] sm:$0xf] %vm1319_vm2, %v1506_v14  ;;  %v1507_v19 = vpack.c.bf16 %v1076_v15, %v1076_v15 }
 0x2a7   : > { %1320 = vst.msk [vmem:[%s2025_s12] sm:$0xf] %vm1319_vm2, %v1504_v17  ;;  %v1505_v20 = vpack.c.bf16 %v1068_v18, %v1068_v18 }
 0x2a8   : > { %1323 = vst.msk [vmem:[%s2025_s12 + $0xc] sm:$0xf] %vm1319_vm2, %v1507_v19 }
 0x2a9   : > { %1321 = vst.msk [vmem:[%s2025_s12 + $0x4] sm:$0xf] %vm1319_vm2, %v1505_v20  ;;  %v1708_v21 = vpop.f32.mrb[20].mxu0 }
 0x2aa   : > { %v1089_v33 = vadd.f32 %v1708_v21, %v2017_v7  ;;  %v1080_v12 = vpop.f32.mrb[21].mxu0 }
 0x2ab   : > { %v1081_v22 = vadd.f32 %v2017_v7, %v1080_v12  ;;  %v1709_v23 = vpop.f32.mrb[22].mxu0 }
 0x2ac   : > { %v1510_v24 = vpack.c.bf16 %v1089_v33, %v1089_v33  ;;  %v1092_v25 = vadd.f32 %v1709_v23, %v2017_v7  ;;  %v1083_v26 = vpop.f32.mrb[23].mxu0 }
 0x2ad   : > { %v1508_v27 = vpack.c.bf16 %v1081_v22, %v1081_v22  ;;  %v1084_v28 = vadd.f32 %v2017_v7, %v1083_v26 }
 0x2ae   : > { %1326 = vst.msk [vmem:[%s2025_s12 + $0x18] sm:$0xf] %vm1319_vm2, %v1510_v24  ;;  %v1511_v29 = vpack.c.bf16 %v1092_v25, %v1092_v25 }
 0x2af   : > { %1324 = vst.msk [vmem:[%s2025_s12 + $0x10] sm:$0xf] %vm1319_vm2, %v1508_v27  ;;  %v1509_v30 = vpack.c.bf16 %v1084_v28, %v1084_v28 }
 0x2b0   : > { %1327 = vst.msk [vmem:[%s2025_s12 + $0x1c] sm:$0xf] %vm1319_vm2, %v1511_v29 }
 0x2b1   : > { %1325 = vst.msk [vmem:[%s2025_s12 + $0x14] sm:$0xf] %vm1319_vm2, %v1509_v30  ;;  %v1712_v31 = vpop.f32.mrb[24].mxu0 }
 0x2b2   : > { %v1105_v32 = vadd.f32 %v1712_v31, %v2017_v7  ;;  %v1096_v34 = vpop.f32.mrb[25].mxu0 }
 0x2b3   : > { %v1097_v35 = vadd.f32 %v2017_v7, %v1096_v34  ;;  %v1713_v36 = vpop.f32.mrb[26].mxu0 }
 0x2b4   : > { %v1514_v37 = vpack.c.bf16 %v1105_v32, %v1105_v32  ;;  %v1108_v38 = vadd.f32 %v1713_v36, %v2017_v7  ;;  %v1099_v39 = vpop.f32.mrb[27].mxu0 }
 0x2b5   : > { %v1512_v40 = vpack.c.bf16 %v1097_v35, %v1097_v35  ;;  %v1100_v41 = vadd.f32 %v2017_v7, %v1099_v39 }
 0x2b6   : > { %1330 = vst.msk [vmem:[%s2025_s12 + $0x28] sm:$0xf] %vm1319_vm2, %v1514_v37  ;;  %v1515_v42 = vpack.c.bf16 %v1108_v38, %v1108_v38 }
 0x2b7   : > { %1328 = vst.msk [vmem:[%s2025_s12 + $0x20] sm:$0xf] %vm1319_vm2, %v1512_v40  ;;  %v1513_v43 = vpack.c.bf16 %v1100_v41, %v1100_v41 }
 0x2b8   : > { %1331 = vst.msk [vmem:[%s2025_s12 + $0x2c] sm:$0xf] %vm1319_vm2, %v1515_v42 }
 0x2b9   : > { %1329 = vst.msk [vmem:[%s2025_s12 + $0x24] sm:$0xf] %vm1319_vm2, %v1513_v43  ;;  %v1716_v44 = vpop.f32.mrb[28].mxu0 }
 0x2ba   : > { %v1121_v45 = vadd.f32 %v1716_v44, %v2017_v7  ;;  %v1112_v46 = vpop.f32.mrb[29].mxu0 }
 0x2bb   : > { %v1113_v47 = vadd.f32 %v2017_v7, %v1112_v46  ;;  %v1717_v48 = vpop.f32.mrb[30].mxu0 }
 0x2bc   : > { %v1518_v49 = vpack.c.bf16 %v1121_v45, %v1121_v45  ;;  %v1124_v50 = vadd.f32 %v1717_v48, %v2017_v7  ;;  %v1115_v51 = vpop.f32.mrb[31].mxu0 }
 0x2bd   : > { %v1516_v52 = vpack.c.bf16 %v1113_v47, %v1113_v47  ;;  %v1116_v53 = vadd.f32 %v2017_v7, %v1115_v51 }
 0x2be   : > { %1334 = vst.msk [vmem:[%s2025_s12 + $0x38] sm:$0xf] %vm1319_vm2, %v1518_v49  ;;  %v1519_v54 = vpack.c.bf16 %v1124_v50, %v1124_v50 }
 0x2bf   : > { %1332 = vst.msk [vmem:[%s2025_s12 + $0x30] sm:$0xf] %vm1319_vm2, %v1516_v52  ;;  %v1517_v55 = vpack.c.bf16 %v1116_v53, %v1116_v53 }
 0x2c0   : > { %1335 = vst.msk [vmem:[%s2025_s12 + $0x3c] sm:$0xf] %vm1319_vm2, %v1519_v54 }
 0x2c1   : > { %1333 = vst.msk [vmem:[%s2025_s12 + $0x34] sm:$0xf] %vm1319_vm2, %v1517_v55  ;;  %v1720_v56 = vpop.f32.mrb[32].mxu0 }
 0x2c2   : > { %v1137_v57 = vadd.f32 %v1720_v56, %v2017_v7  ;;  %v1128_v58 = vpop.f32.mrb[33].mxu0 }
 0x2c3   : > { %v1129_v59 = vadd.f32 %v2017_v7, %v1128_v58  ;;  %v1721_v60 = vpop.f32.mrb[34].mxu0 }
 0x2c4   : > { %v1522_v61 = vpack.c.bf16 %v1137_v57, %v1137_v57  ;;  %v1140_v62 = vadd.f32 %v1721_v60, %v2017_v7  ;;  %v1131_v63 = vpop.f32.mrb[35].mxu0 }
 0x2c5   : > { %v1520_v0 = vpack.c.bf16 %v1129_v59, %v1129_v59  ;;  %v1132_v1 = vadd.f32 %v2017_v7, %v1131_v63 }
 0x2c6   : > { %1338 = vst.msk [vmem:[%s2025_s12 + $0x48] sm:$0xf] %vm1319_vm2, %v1522_v61  ;;  %v1523_v2 = vpack.c.bf16 %v1140_v62, %v1140_v62 }
 0x2c7   : > { %1336 = vst.msk [vmem:[%s2025_s12 + $0x40] sm:$0xf] %vm1319_vm2, %v1520_v0  ;;  %v1521_v3 = vpack.c.bf16 %v1132_v1, %v1132_v1 }
 0x2c8   : > { %1339 = vst.msk [vmem:[%s2025_s12 + $0x4c] sm:$0xf] %vm1319_vm2, %v1523_v2 }
 0x2c9   : > { %1337 = vst.msk [vmem:[%s2025_s12 + $0x44] sm:$0xf] %vm1319_vm2, %v1521_v3  ;;  %v1724_v4 = vpop.f32.mrb[36].mxu0 }
 0x2ca   : > { %v1153_v5 = vadd.f32 %v1724_v4, %v2017_v7  ;;  %v1144_v6 = vpop.f32.mrb[37].mxu0 }
 0x2cb   : > { %v1145_v8 = vadd.f32 %v2017_v7, %v1144_v6  ;;  %v1725_v10 = vpop.f32.mrb[38].mxu0 }
 0x2cc   : > { %v1526_v11 = vpack.c.bf16 %v1153_v5, %v1153_v5  ;;  %v1156_v9 = vadd.f32 %v1725_v10, %v2017_v7  ;;  %v1147_v13 = vpop.f32.mrb[39].mxu0 }
 0x2cd   : > { %v1524_v14 = vpack.c.bf16 %v1145_v8, %v1145_v8  ;;  %v1148_v15 = vadd.f32 %v2017_v7, %v1147_v13 }
 0x2ce   : > { %1342 = vst.msk [vmem:[%s2025_s12 + $0x58] sm:$0xf] %vm1319_vm2, %v1526_v11  ;;  %v1527_v16 = vpack.c.bf16 %v1156_v9, %v1156_v9 }
 0x2cf   : > { %1340 = vst.msk [vmem:[%s2025_s12 + $0x50] sm:$0xf] %vm1319_vm2, %v1524_v14  ;;  %v1525_v17 = vpack.c.bf16 %v1148_v15, %v1148_v15 }
 0x2d0   : > { %1343 = vst.msk [vmem:[%s2025_s12 + $0x5c] sm:$0xf] %vm1319_vm2, %v1527_v16 }
 0x2d1   : > { %1341 = vst.msk [vmem:[%s2025_s12 + $0x54] sm:$0xf] %vm1319_vm2, %v1525_v17  ;;  %v1728_v18 = vpop.f32.mrb[40].mxu0 }
 0x2d2   : > { %v1169_v19 = vadd.f32 %v1728_v18, %v2017_v7  ;;  %v1160_v20 = vpop.f32.mrb[41].mxu0 }
 0x2d3   : > { %v1161_v21 = vadd.f32 %v2017_v7, %v1160_v20  ;;  %v1729_v33 = vpop.f32.mrb[42].mxu0 }
 0x2d4   : > { %v1530_v12 = vpack.c.bf16 %v1169_v19, %v1169_v19  ;;  %v1172_v22 = vadd.f32 %v1729_v33, %v2017_v7  ;;  %v1163_v23 = vpop.f32.mrb[43].mxu0 }
 0x2d5   : > { %v1528_v24 = vpack.c.bf16 %v1161_v21, %v1161_v21  ;;  %v1164_v25 = vadd.f32 %v2017_v7, %v1163_v23 }
 0x2d6   : > { %1346 = vst.msk [vmem:[%s2025_s12 + $0x68] sm:$0xf] %vm1319_vm2, %v1530_v12  ;;  %v1531_v26 = vpack.c.bf16 %v1172_v22, %v1172_v22 }
 0x2d7   : > { %1344 = vst.msk [vmem:[%s2025_s12 + $0x60] sm:$0xf] %vm1319_vm2, %v1528_v24  ;;  %v1529_v27 = vpack.c.bf16 %v1164_v25, %v1164_v25 }
 0x2d8   : > { %1347 = vst.msk [vmem:[%s2025_s12 + $0x6c] sm:$0xf] %vm1319_vm2, %v1531_v26 }
 0x2d9   : > { %1345 = vst.msk [vmem:[%s2025_s12 + $0x64] sm:$0xf] %vm1319_vm2, %v1529_v27  ;;  %v1732_v28 = vpop.f32.mrb[44].mxu0 }
 0x2da   : > { %v1185_v29 = vadd.f32 %v1732_v28, %v2017_v7  ;;  %v1176_v30 = vpop.f32.mrb[45].mxu0 }
 0x2db   : > { %v1177_v31 = vadd.f32 %v2017_v7, %v1176_v30  ;;  %v1733_v32 = vpop.f32.mrb[46].mxu0 }
 0x2dc   : > { %v1534_v34 = vpack.c.bf16 %v1185_v29, %v1185_v29  ;;  %v1188_v35 = vadd.f32 %v1733_v32, %v2017_v7  ;;  %v1179_v36 = vpop.f32.mrb[47].mxu0 }
 0x2dd   : > { %v1532_v37 = vpack.c.bf16 %v1177_v31, %v1177_v31  ;;  %v1180_v38 = vadd.f32 %v2017_v7, %v1179_v36 }
 0x2de   : > { %1350 = vst.msk [vmem:[%s2025_s12 + $0x78] sm:$0xf] %vm1319_vm2, %v1534_v34  ;;  %v1535_v39 = vpack.c.bf16 %v1188_v35, %v1188_v35 }
 0x2df   : > { %1348 = vst.msk [vmem:[%s2025_s12 + $0x70] sm:$0xf] %vm1319_vm2, %v1532_v37  ;;  %v1533_v40 = vpack.c.bf16 %v1180_v38, %v1180_v38 }
 0x2e0   : > { %1351 = vst.msk [vmem:[%s2025_s12 + $0x7c] sm:$0xf] %vm1319_vm2, %v1535_v39 }
 0x2e1   : > { %1349 = vst.msk [vmem:[%s2025_s12 + $0x74] sm:$0xf] %vm1319_vm2, %v1533_v40 }
 0x2e2 PF: > { %s17_s24 = sadd.s32 1, %s1788_s24  }
 0x2e3   : > { %p14_p4 = scmp.ge.s32.totalorder %s17_s24, 4  }
 0x2e5   :  { %16 = sbr.rel (!%p14_p4) target bundleno = 1 (0x1), region = 78 }

</bundles_post_ra>
